<compile_context>
chip_gen: v6e
topology: v6e:2x2x1
jax: 0.10.0
libtpu: 0.0.40
codegen_flags: <defaults>
</compile_context>

<pallas_src>
import math

import jax
import jax.numpy as jnp
from jax import lax
from jax.experimental import pallas as pl
from jax.experimental.pallas import tpu as pltpu

# --- hyper-parameters (module defaults are features=256, knn=32, blocks=3) --
FEATURES = 128                    # lane-dense (>=128); production uses 256
NUM_BLOCKS = 3
KNN = 4                           # toy value; module default 32 needs larger crystals
NUM_RBF = 16
RBF_GAMMA = 10.0
RBF_DMU = 1.0 / (NUM_RBF - 1)     # linspace(0, 1, NUM_RBF) spacing
Z_MAX = 16
BIG = 1.0e3                       # "infinite" distance sentinel
ROW_TILE_CAP = 256                # per-kernel row tile upper bound


def _round_up(v, m):
    return ((v + m - 1) // m) * m


def _vmem_limit_bytes():
    # Derive the scoped-VMEM limit per TPU generation (v5e/v6e: 128 MiB,
    # v7x: 64 MiB physical) instead of a hard-coded constant.
    try:
        cap = int(pltpu.get_tpu_info().vmem_capacity_bytes)
    except Exception:
        cap = 64 * 1024 * 1024
    return max(32 * 1024 * 1024, int(cap * 0.6))


def _min_image(xr_col, xc_row):
    # Minimum-image wrapped difference for an identity lattice.
    dc = xr_col - xc_row
    return dc - jnp.floor(dc + 0.5)


# ---------------------------------------------------------------------------
# Kernel 1: per-row k-th smallest periodic distance (no dense dist output)
# ---------------------------------------------------------------------------
def _kth_kernel(xr_ref, xc_ref, brow_ref, bcol_ref, kth_ref):
    tq = xr_ref.shape[0]
    n = xc_ref.shape[1]
    row0 = pl.multiple_of(pl.program_id(0) * tq, tq)
    row_ids = row0 + lax.broadcasted_iota(jnp.int32, (tq, n), 0)
    col_ids = lax.broadcasted_iota(jnp.int32, (tq, n), 1)
    same = (brow_ref[...] == bcol_ref[...]) & (row_ids != col_ids)

    d2 = jnp.zeros((tq, n), jnp.float32)
    for c in range(3):
        dc = _min_image(xr_ref[:, c:c + 1], xc_ref[c:c + 1, :])
        d2 = d2 + dc * dc
    work = jnp.where(same, jnp.sqrt(d2), BIG)

    # KNN passes of row-min + mask-out (pure VPU/XLU).  Exact ties may be
    # collapsed into one pass — same tie behaviour class as a threshold kNN.
    kth = jnp.min(work, axis=1, keepdims=True)
    for p in range(1, KNN):
        work = jnp.where(work == kth, BIG, work)
        kth = jnp.min(work, axis=1, keepdims=True)
    kth_ref[...] = kth                                     # (tq, 1)


# ---------------------------------------------------------------------------
# Kernel 2 (x NUM_BLOCKS): one message-passing block, row-tiled
# ---------------------------------------------------------------------------
def _mp_block_kernel(xr_ref, xc_ref, brow_ref, bcol_ref, kth_ref, h_ref,
                     w12_ref, wf_ref, hout_ref):
    tq = xr_ref.shape[0]
    n = xc_ref.shape[1]
    bf16 = jnp.bfloat16
    row0 = pl.multiple_of(pl.program_id(0) * tq, tq)

    row_ids = row0 + lax.broadcasted_iota(jnp.int32, (tq, n), 0)
    col_ids = lax.broadcasted_iota(jnp.int32, (tq, n), 1)
    same = (brow_ref[...] == bcol_ref[...]) & (row_ids != col_ids)

    # (tq, N) geometry slab rebuilt in-kernel — never touches HBM.
    d2 = jnp.zeros((tq, n), jnp.float32)
    for c in range(3):
        dc = _min_image(xr_ref[:, c:c + 1], xc_ref[c:c + 1, :])
        d2 = d2 + dc * dc
    dist = jnp.sqrt(d2)
    edge = same & (dist <= kth_ref[...] + 1e-6)
    maskf = edge.astype(jnp.float32)
    d_safe = jnp.where(edge, dist, 0.0)                     # keeps exps finite

    # Factorized RBF gate: exp(-g(d-mu_r)^2) = exp(-g d^2) * p^r * C_r,
    # p = exp(2 g dmu d); C_r folded into wf (SMEM).  2 exps + VPU muls.
    base = jnp.exp(-RBF_GAMMA * d_safe * d_safe)
    p = jnp.exp((2.0 * RBF_GAMMA * RBF_DMU) * d_safe)
    pr = base
    gate = wf_ref[0] * pr
    for r in range(1, NUM_RBF):
        pr = pr * p
        gate = gate + wf_ref[r] * pr
    adj = (gate * maskf).astype(bf16)                       # (tq, N) bf16, MXU-native

    # (adj @ (h @ w1)) @ w2 == (adj @ h) @ (w1 @ w2): w12 folded at init.
    agg = jnp.dot(adj, h_ref[...].astype(bf16),
                  preferred_element_type=jnp.float32)       # (tq, F)
    upd = jnp.dot(agg.astype(bf16), w12_ref[...].astype(bf16),
                  preferred_element_type=jnp.float32)       # (tq, F)

    h_tile = h_ref[pl.ds(row0, tq), :]                      # residual rows of this tile
    hout_ref[...] = h_tile + jax.nn.silu(upd)


# ---------------------------------------------------------------------------
# Kernel 3: fused q/k projection (row-tiled)
# ---------------------------------------------------------------------------
def _qk_proj_kernel(h_ref, wqk_ref, q_ref, k_ref):
    feat = h_ref.shape[1]
    qk = jnp.dot(h_ref[...].astype(jnp.bfloat16), wqk_ref[...].astype(jnp.bfloat16),
                 preferred_element_type=jnp.float32)        # (tq, 2F)
    q_ref[...] = qk[:, :feat]
    k_ref[...] = qk[:, feat:]


# ---------------------------------------------------------------------------
# Kernel 4: force / trajectory head + per-atom stress columns (row-tiled)
# ---------------------------------------------------------------------------
def _head_kernel(xr_ref, xc_ref, brow_ref, bcol_ref, kth_ref, q_ref, k_ref,
                 xprime_ref, xtraj_ref, smat_ref):
    tq = xr_ref.shape[0]
    n = xc_ref.shape[1]
    bf16 = jnp.bfloat16
    row0 = pl.multiple_of(pl.program_id(0) * tq, tq)

    row_ids = row0 + lax.broadcasted_iota(jnp.int32, (tq, n), 0)
    col_ids = lax.broadcasted_iota(jnp.int32, (tq, n), 1)
    same = (brow_ref[...] == bcol_ref[...]) & (row_ids != col_ids)

    d2 = jnp.zeros((tq, n), jnp.float32)
    for c in range(3):
        dc = _min_image(xr_ref[:, c:c + 1], xc_ref[c:c + 1, :])
        d2 = d2 + dc * dc
    dist = jnp.sqrt(d2)
    edge = same & (dist <= kth_ref[...] + 1e-6)
    maskf = edge.astype(jnp.float32)

    # Attention coefficients; the 1/sqrt(F) scale is folded into wqk at init.
    coeff = lax.dot_general(q_ref[...].astype(bf16), k_ref[...].astype(bf16),
                            (((1,), (1,)), ((), ())),
                            preferred_element_type=jnp.float32)   # (tq, N)
    coeff = coeff * maskf

    inv = 1.0 / (dist + 1e-9)                               # non-edges already zeroed by coeff

    traj_cols = []
    s_cols = []                                             # order: xx, xy, xz, yy, yz, zz
    for a in range(3):
        dir_a = _min_image(xr_ref[:, a:a + 1], xc_ref[a:a + 1, :]) * inv
        cda = coeff * dir_a
        traj_cols.append(jnp.sum(cda, axis=1, keepdims=True))
        for c in range(a, 3):
            dir_c = dir_a if c == a else \
                _min_image(xr_ref[:, c:c + 1], xc_ref[c:c + 1, :]) * inv
            s_cols.append(jnp.sum(cda * dir_c, axis=1, keepdims=True))
        # at most two direction planes live at any point

    x_traj = jnp.concatenate(traj_cols, axis=1)             # (tq, 3)
    xtraj_ref[...] = x_traj
    xp = xr_ref[...] + x_traj
    xprime_ref[...] = xp - jnp.floor(xp)                    # == (x + traj) % 1.0
    smat_ref[...] = jnp.concatenate(s_cols, axis=1)         # (tq, 6) unique stress comps


# ---------------------------------------------------------------------------
# Parameter / buffer construction (deterministic, in-script)
# ---------------------------------------------------------------------------
def init_params(seed=0):
    key = jax.random.PRNGKey(seed)
    k_emb, k_wf, k_w1, k_w2, k_wq, k_wk = jax.random.split(key, 6)
    scale = 1.0 / math.sqrt(FEATURES)
    w1 = scale * jax.random.normal(k_w1, (NUM_BLOCKS, FEATURES, FEATURES), jnp.float32)
    w2 = scale * jax.random.normal(k_w2, (NUM_BLOCKS, FEATURES, FEATURES), jnp.float32)
    wq = scale * jax.random.normal(k_wq, (FEATURES, FEATURES), jnp.float32)
    wk = scale * jax.random.normal(k_wk, (FEATURES, FEATURES), jnp.float32)
    wf = 0.1 * jax.random.normal(k_wf, (NUM_BLOCKS, NUM_RBF), jnp.float32)
    mu = jnp.linspace(0.0, 1.0, NUM_RBF).astype(jnp.float32)
    return {
        "emb": jax.random.normal(k_emb, (Z_MAX, FEATURES), jnp.float32),
        # (adj @ (h @ w1)) @ w2 == (adj @ h) @ (w1 @ w2)  -> fold at init.
        "w12": jnp.einsum("bij,bjk->bik", w1, w2),
        # attention scale folded into the q-projection columns.
        "wqk": jnp.concatenate([wq * (1.0 / math.sqrt(FEATURES)), wk], axis=1),
        # fold exp(-g*mu_r^2) into the RBF mixing weights (factorized RBF).
        "wf_fold": wf * jnp.exp(-RBF_GAMMA * mu * mu)[None, :],
    }


def make_diffusion_buffers(x_betas=(1e-6, 2e-4), diffusion_steps=100):
    # Buffers from __init__ (not used by forward, kept for fidelity).
    betas = jnp.linspace(x_betas[0], x_betas[1], diffusion_steps)
    sigma = jnp.sqrt(betas)
    alphas = 1.0 - betas
    alphas_bar = jnp.cumprod(alphas)
    return betas, sigma, alphas, alphas_bar


# ---------------------------------------------------------------------------
# Forward wrapper
# ---------------------------------------------------------------------------
def gemsnet_diffusion_forward(x, z, num_atoms, params):
    n = x.shape[0]
    n_cryst = num_atoms.shape[0]
    feat = params["emb"].shape[1]

    # Row tile + padding (padded atoms get unique negative crystal ids so they
    # never form edges; padded rows are sliced off at the end).
    tq = min(ROW_TILE_CAP, _round_up(max(n, 8), 8))
    n_pad = _round_up(n, tq)
    pad = n_pad - n

    batch = jnp.repeat(jnp.arange(n_cryst, dtype=jnp.int32), num_atoms,
                       total_repeat_length=n)
    if pad:
        x_p = jnp.concatenate([x, jnp.zeros((pad, 3), x.dtype)], axis=0)
        z_p = jnp.concatenate([z, jnp.zeros((pad,), z.dtype)], axis=0)
        batch_p = jnp.concatenate(
            [batch, -1 - jnp.arange(pad, dtype=jnp.int32)], axis=0)
    else:
        x_p, z_p, batch_p = x, z, batch

    brow = batch_p.astype(jnp.float32).reshape(n_pad, 1)
    bcol = batch_p.astype(jnp.float32).reshape(1, n_pad)
    xc = x_p.T                                              # (3, N_pad): lane = atom j

    grid = (n_pad // tq,)
    cparams = pltpu.CompilerParams(
        dimension_semantics=("parallel",),
        vmem_limit_bytes=_vmem_limit_bytes())

    row_spec3 = pl.BlockSpec((tq, 3), lambda i: (i, 0))
    row_spec1 = pl.BlockSpec((tq, 1), lambda i: (i, 0))
    row_specf = pl.BlockSpec((tq, feat), lambda i: (i, 0))
    xc_spec = pl.BlockSpec((3, n_pad), lambda i: (0, 0))
    bcol_spec = pl.BlockSpec((1, n_pad), lambda i: (0, 0))
    full = lambda shape: pl.BlockSpec(shape, lambda i: (0, 0))
    smem = pl.BlockSpec(memory_space=pltpu.MemorySpace.SMEM)

    # --- kernel 1: per-row k-th neighbor threshold (no dense dist to HBM) ---
    kth = pl.pallas_call(
        _kth_kernel,
        out_shape=jax.ShapeDtypeStruct((n_pad, 1), jnp.float32),
        grid=grid,
        in_specs=[row_spec3, xc_spec, row_spec1, bcol_spec],
        out_specs=row_spec1,
        compiler_params=cparams,
    )(x_p, xc, brow, bcol)

    # --- glue: atom-species embedding gather -------------------------------
    # TODO(synk): move the embedding gather into a Pallas DMA-gather kernel if
    # it ever shows up in profiles; it is O(N*F) and negligible here.
    h = params["emb"][z_p]                                  # (N_pad, F)

    # --- kernels 2..: message-passing blocks, row-tiled, h resident --------
    for b in range(NUM_BLOCKS):
        h = pl.pallas_call(
            _mp_block_kernel,
            out_shape=jax.ShapeDtypeStruct((n_pad, feat), jnp.float32),
            grid=grid,
            in_specs=[row_spec3, xc_spec, row_spec1, bcol_spec, row_spec1,
                      full((n_pad, feat)), full((feat, feat)), smem],
            out_specs=row_specf,
            compiler_params=cparams,
        )(x_p, xc, brow, bcol, kth, h, params["w12"][b], params["wf_fold"][b])

    # --- kernel 3: fused q/k projection -------------------------------------
    q, k = pl.pallas_call(
        _qk_proj_kernel,
        out_shape=(jax.ShapeDtypeStruct((n_pad, feat), jnp.float32),
                   jax.ShapeDtypeStruct((n_pad, feat), jnp.float32)),
        grid=grid,
        in_specs=[row_specf, full((feat, 2 * feat))],
        out_specs=(row_specf, row_specf),
        compiler_params=cparams,
    )(h, params["wqk"])

    # --- kernel 4: trajectory + per-atom stress columns ---------------------
    x_prime_p, x_traj_p, smat_p = pl.pallas_call(
        _head_kernel,
        out_shape=(jax.ShapeDtypeStruct((n_pad, 3), jnp.float32),
                   jax.ShapeDtypeStruct((n_pad, 3), jnp.float32),
                   jax.ShapeDtypeStruct((n_pad, 6), jnp.float32)),
        grid=grid,
        in_specs=[row_spec3, xc_spec, row_spec1, bcol_spec, row_spec1,
                  row_specf, full((n_pad, feat))],
        out_specs=(row_spec3, row_spec3, pl.BlockSpec((tq, 6), lambda i: (i, 0))),
        compiler_params=cparams,
    )(x_p, xc, brow, bcol, kth, q, k)

    x_prime = x_prime_p[:n]
    x_traj = x_traj_p[:n]
    smat = smat_p[:n]

    # --- glue: tiny per-crystal reduction (O(N*6)) and symmetric assembly ---
    s6 = jax.ops.segment_sum(smat, batch, num_segments=n_cryst)    # (B, 6)
    xx, xy, xz, yy, yz, zz = [s6[:, i] for i in range(6)]
    rho = jnp.stack([jnp.stack([xx, xy, xz], axis=-1),
                     jnp.stack([xy, yy, yz], axis=-1),
                     jnp.stack([xz, yz, zz], axis=-1)], axis=-2)   # (B, 3, 3)
    rho_prime = rho + jnp.eye(3, dtype=jnp.float32)[None]
    return x_prime, x_traj, rho_prime


# ---------------------------------------------------------------------------
if __name__ == "__main__":
    key = jax.random.PRNGKey(0)
    k_x, k_z = jax.random.split(key)

    num_atoms = jnp.array([8, 8], dtype=jnp.int32)      # B = 2 crystals
    n_total = int(num_atoms.sum())                      # N = 16 atoms
    x = jax.random.uniform(k_x, (n_total, 3), dtype=jnp.float32)   # frac coords
    z = jax.random.randint(k_z, (n_total,), 1, Z_MAX, dtype=jnp.int32)

    params = init_params(seed=0)
    _ = make_diffusion_buffers()   # x_betas / x_sigma / x_alphas_bar (unused by forward)

    x_prime, x_traj, rho_prime = gemsnet_diffusion_forward(x, z, num_atoms, params)
    x_prime, x_traj, rho_prime = jax.block_until_ready((x_prime, x_traj, rho_prime))

    assert x_prime.shape == (n_total, 3)
    assert x_traj.shape == (n_total, 3)
    assert rho_prime.shape == (num_atoms.shape[0], 3, 3)
    assert bool(jnp.all(jnp.isfinite(x_prime)))
    assert bool(jnp.all(jnp.isfinite(x_traj)))
    assert bool(jnp.all(jnp.isfinite(rho_prime)))
    assert bool(jnp.all((x_prime >= 0.0) & (x_prime < 1.0)))   # (x + traj) % 1.0
    print("KERNEL_OK")
</pallas_src>

<mosaic_0001>
module attributes {stable_mosaic.version = 11 : i64} {
  func.func @_kth_kernel(%arg0: i32, %arg1: memref<16x3xf32, #tpu.memory_space<vmem>>, %arg2: memref<3x16xf32, #tpu.memory_space<vmem>>, %arg3: memref<16x1xf32, #tpu.memory_space<vmem>>, %arg4: memref<1x16xf32, #tpu.memory_space<vmem>>, %arg5: memref<16x1xf32, #tpu.memory_space<vmem>>) attributes {dimension_semantics = [#tpu.dimension_semantics<parallel>], iteration_bounds = array<i64: 1>, scalar_prefetch = 0 : i64, scratch_operands = 0 : i64, tpu.core_type = #tpu.core_type<tc>, window_params = [{transform_indices = @transform_0, window_bounds = array<i64: 16, 3>}, {pipeline_mode = #tpu.pipeline_mode<synchronous>, transform_indices = @transform_1, window_bounds = array<i64: 3, 16>}, {transform_indices = @transform_2, window_bounds = array<i64: 16, 1>}, {pipeline_mode = #tpu.pipeline_mode<synchronous>, transform_indices = @transform_3, window_bounds = array<i64: 1, 16>}, {transform_indices = @transform_4, window_bounds = array<i64: 16, 1>}]} {
    %c16_i32 = arith.constant 16 : i32
    %0 = arith.muli %arg0, %c16_i32 : i32
    %1 = tpu.assume_multiple %0, 16 : i32
    %2 = tpu.iota {dimensions = array<i32: 0>} : vector<16x16xi32>
    %3 = vector.broadcast %1 : i32 to vector<16x16xi32>
    %4 = arith.addi %3, %2 : vector<16x16xi32>
    %5 = tpu.iota {dimensions = array<i32: 1>} : vector<16x16xi32>
    %c0 = arith.constant 0 : index
    %c0_0 = arith.constant 0 : index
    %6 = vector.load %arg3[%c0, %c0_0] : memref<16x1xf32, #tpu.memory_space<vmem>>, vector<16x1xf32>
    %c0_1 = arith.constant 0 : index
    %c0_2 = arith.constant 0 : index
    %7 = vector.load %arg4[%c0_1, %c0_2] : memref<1x16xf32, #tpu.memory_space<vmem>>, vector<1x16xf32>
    %8 = vector.broadcast %6 : vector<16x1xf32> to vector<16x16xf32>
    %9 = vector.broadcast %7 : vector<1x16xf32> to vector<16x16xf32>
    %10 = arith.cmpf oeq, %8, %9 : vector<16x16xf32>
    %11 = arith.cmpi ne, %4, %5 : vector<16x16xi32>
    %12 = arith.andi %10, %11 : vector<16x16xi1>
    %cst = arith.constant 0.000000e+00 : f32
    %13 = vector.broadcast %cst : f32 to vector<16x16xf32>
    %c0_3 = arith.constant 0 : index
    %c0_4 = arith.constant 0 : index
    %14 = vector.load %arg1[%c0_3, %c0_4] : memref<16x3xf32, #tpu.memory_space<vmem>>, vector<16x1xf32>
    %c0_5 = arith.constant 0 : index
    %c0_6 = arith.constant 0 : index
    %15 = vector.load %arg2[%c0_5, %c0_6] : memref<3x16xf32, #tpu.memory_space<vmem>>, vector<1x16xf32>
    %16 = vector.broadcast %14 : vector<16x1xf32> to vector<16x16xf32>
    %17 = vector.broadcast %15 : vector<1x16xf32> to vector<16x16xf32>
    %18 = arith.subf %16, %17 : vector<16x16xf32>
    %cst_7 = arith.constant 5.000000e-01 : f32
    %19 = vector.broadcast %cst_7 : f32 to vector<16x16xf32>
    %20 = arith.addf %18, %19 : vector<16x16xf32>
    %21 = math.floor %20 : vector<16x16xf32>
    %22 = arith.subf %18, %21 : vector<16x16xf32>
    %23 = arith.mulf %22, %22 : vector<16x16xf32>
    %24 = arith.addf %13, %23 : vector<16x16xf32>
    %c0_8 = arith.constant 0 : index
    %c1 = arith.constant 1 : index
    %25 = vector.load %arg1[%c0_8, %c1] : memref<16x3xf32, #tpu.memory_space<vmem>>, vector<16x1xf32>
    %c1_9 = arith.constant 1 : index
    %c0_10 = arith.constant 0 : index
    %26 = vector.load %arg2[%c1_9, %c0_10] : memref<3x16xf32, #tpu.memory_space<vmem>>, vector<1x16xf32>
    %27 = vector.broadcast %25 : vector<16x1xf32> to vector<16x16xf32>
    %28 = vector.broadcast %26 : vector<1x16xf32> to vector<16x16xf32>
    %29 = arith.subf %27, %28 : vector<16x16xf32>
    %cst_11 = arith.constant 5.000000e-01 : f32
    %30 = vector.broadcast %cst_11 : f32 to vector<16x16xf32>
    %31 = arith.addf %29, %30 : vector<16x16xf32>
    %32 = math.floor %31 : vector<16x16xf32>
    %33 = arith.subf %29, %32 : vector<16x16xf32>
    %34 = arith.mulf %33, %33 : vector<16x16xf32>
    %35 = arith.addf %24, %34 : vector<16x16xf32>
    %c0_12 = arith.constant 0 : index
    %c2 = arith.constant 2 : index
    %36 = vector.load %arg1[%c0_12, %c2] : memref<16x3xf32, #tpu.memory_space<vmem>>, vector<16x1xf32>
    %c2_13 = arith.constant 2 : index
    %c0_14 = arith.constant 0 : index
    %37 = vector.load %arg2[%c2_13, %c0_14] : memref<3x16xf32, #tpu.memory_space<vmem>>, vector<1x16xf32>
    %38 = vector.broadcast %36 : vector<16x1xf32> to vector<16x16xf32>
    %39 = vector.broadcast %37 : vector<1x16xf32> to vector<16x16xf32>
    %40 = arith.subf %38, %39 : vector<16x16xf32>
    %cst_15 = arith.constant 5.000000e-01 : f32
    %41 = vector.broadcast %cst_15 : f32 to vector<16x16xf32>
    %42 = arith.addf %40, %41 : vector<16x16xf32>
    %43 = math.floor %42 : vector<16x16xf32>
    %44 = arith.subf %40, %43 : vector<16x16xf32>
    %45 = arith.mulf %44, %44 : vector<16x16xf32>
    %46 = arith.addf %35, %45 : vector<16x16xf32>
    %47 = math.sqrt %46 : vector<16x16xf32>
    %cst_16 = arith.constant 1.000000e+03 : f32
    %48 = vector.broadcast %cst_16 : f32 to vector<16x16xf32>
    %49 = arith.select %12, %47, %48 : vector<16x16xi1>, vector<16x16xf32>
    %cst_17 = arith.constant dense<0x7F800000> : vector<16xf32>
    %50 = vector.multi_reduction <minimumf>, %49, %cst_17 [1] : vector<16x16xf32> to vector<16xf32>
    %51 = vector.shape_cast %50 : vector<16xf32> to vector<16x1xf32>
    %52 = vector.broadcast %51 : vector<16x1xf32> to vector<16x16xf32>
    %53 = arith.cmpf oeq, %49, %52 : vector<16x16xf32>
    %cst_18 = arith.constant 1.000000e+03 : f32
    %54 = vector.broadcast %cst_18 : f32 to vector<16x16xf32>
    %55 = arith.select %53, %54, %49 : vector<16x16xi1>, vector<16x16xf32>
    %cst_19 = arith.constant dense<0x7F800000> : vector<16xf32>
    %56 = vector.multi_reduction <minimumf>, %55, %cst_19 [1] : vector<16x16xf32> to vector<16xf32>
    %57 = vector.shape_cast %56 : vector<16xf32> to vector<16x1xf32>
    %58 = vector.broadcast %57 : vector<16x1xf32> to vector<16x16xf32>
    %59 = arith.cmpf oeq, %55, %58 : vector<16x16xf32>
    %cst_20 = arith.constant 1.000000e+03 : f32
    %60 = vector.broadcast %cst_20 : f32 to vector<16x16xf32>
    %61 = arith.select %59, %60, %55 : vector<16x16xi1>, vector<16x16xf32>
    %cst_21 = arith.constant dense<0x7F800000> : vector<16xf32>
    %62 = vector.multi_reduction <minimumf>, %61, %cst_21 [1] : vector<16x16xf32> to vector<16xf32>
    %63 = vector.shape_cast %62 : vector<16xf32> to vector<16x1xf32>
    %64 = vector.broadcast %63 : vector<16x1xf32> to vector<16x16xf32>
    %65 = arith.cmpf oeq, %61, %64 : vector<16x16xf32>
    %cst_22 = arith.constant 1.000000e+03 : f32
    %66 = vector.broadcast %cst_22 : f32 to vector<16x16xf32>
    %67 = arith.select %65, %66, %61 : vector<16x16xi1>, vector<16x16xf32>
    %cst_23 = arith.constant dense<0x7F800000> : vector<16xf32>
    %68 = vector.multi_reduction <minimumf>, %67, %cst_23 [1] : vector<16x16xf32> to vector<16xf32>
    %69 = vector.shape_cast %68 : vector<16xf32> to vector<16x1xf32>
    %c0_24 = arith.constant 0 : index
    %c0_25 = arith.constant 0 : index
    %70 = vector.load %arg5[%c0_24, %c0_25] : memref<16x1xf32, #tpu.memory_space<vmem>>, vector<16x1xf32>
    tpu.vector_store %arg5[%c0_24, %c0_25], %69 {strides = array<i32>} : memref<16x1xf32, #tpu.memory_space<vmem>>, vector<16x1xf32>,
    return
  }
  func.func @transform_0(%arg0: i32) -> (i32, i32) {
    %c0_i32 = arith.constant 0 : i32
    %c0_i32_0 = arith.constant 0 : i32
    return %arg0, %c0_i32 : i32, i32
  }
  func.func @transform_1(%arg0: i32) -> (i32, i32) {
    %c0_i32 = arith.constant 0 : i32
    %c0_i32_0 = arith.constant 0 : i32
    %c0_i32_1 = arith.constant 0 : i32
    return %c0_i32, %c0_i32_0 : i32, i32
  }
  func.func @transform_2(%arg0: i32) -> (i32, i32) {
    %c0_i32 = arith.constant 0 : i32
    %c0_i32_0 = arith.constant 0 : i32
    return %arg0, %c0_i32 : i32, i32
  }
  func.func @transform_3(%arg0: i32) -> (i32, i32) {
    %c0_i32 = arith.constant 0 : i32
    %c0_i32_0 = arith.constant 0 : i32
    %c0_i32_1 = arith.constant 0 : i32
    return %c0_i32, %c0_i32_0 : i32, i32
  }
  func.func @transform_4(%arg0: i32) -> (i32, i32) {
    %c0_i32 = arith.constant 0 : i32
    %c0_i32_0 = arith.constant 0 : i32
    return %arg0, %c0_i32 : i32, i32
  }
}

</mosaic_0001>

<bundles_post_ra>
// kernel: tpu_custom_call.1
= control target key start
LH: loop header
LB: loop body
LE: loop exit
PB: predicated region body
PF: predicated region fallthrough
CT: control target
= control target key end

     0   :  { %v208_v0 = vmov 1   ;;  %v209_v1 = vmov 0   ;;  %v210_v4 = vmov 2   ;;  %v18_v50 = vlaneseq  ;;  %s274_s0 = inlined_call_operand.vmem [shape: f32[16,3], index: 0, kind: input, shape index: {}]   ;;  %s275_s2 = inlined_call_operand.vmem [shape: f32[16,1], index: 2, kind: input, shape index: {}]   ;;  %s276_s1 = inlined_call_operand.vmem [shape: f32[3,16], index: 1, kind: input, shape index: {}]   ;;  %s277_s3 = inlined_call_operand.vmem [shape: f32[1,16], index: 3, kind: input, shape index: {}]   ;;  %s278_s4 = inlined_call_operand.vmem [shape: f32[16,1], index: 4, kind: output, shape index: {}]  }
   0x1   :  { %198 = vset.pattern.permute.xlu1 %v208_v0  ;;  %197 = vset.pattern.permute.xlu0 %v209_v1  ;;  %v51_v2 = vld [vmem:[%s274_s0] sm:$0xff]  ;;  %v52_v3 = vld [vmem:[%s274_s0 + $0x8] sm:$0xff]  ;;  %vm146_vm6 = vcmask 130048  }
   0x2   :  { %82 = vperm.xlu1 %198, %v51_v2   ;;  %56 = vperm.xlu0 %197, %v51_v2   ;;  %v26_v5 = vld [vmem:[%s275_s2] sm:$0xff]  ;;  %v27_v6 = vld [vmem:[%s275_s2 + $0x8] sm:$0xff]  ;;  %v19_v51 = vshrl.u32 %v18_v50, 7  ;;  %v25_v52 = vand.u32 127, %v18_v50 }
   0x3   :  { %v192_v7 = vld [vmem:[%s276_s1 + $0x1] ss:$0 sm:$0xff]  ;;  %v191_v8 = vld [vmem:[%s276_s1] ss:$0 sm:$0xff]  ;;  %v193_v23 = vld [vmem:[%s276_s1 + $0x2] ss:$0 sm:$0xff] }
   0x4   :  { %v20_v53 = vadd.s32 8, %v19_v51  ;;  %v190_v54 = vld [vmem:[%s277_s3] ss:$0 sm:$0xff]  ;;  %vm47_vm2 = vcmp.ne.s32.totalorder %v19_v51, %v25_v52 }
   0x6   :  { %86 = vperm.xlu1 %198, %v52_v3   ;;  %61 = vperm.xlu0 %197, %v52_v3   ;;  %vm48_vm0 = vcmp.ne.s32.totalorder %v20_v53, %v25_v52 }
   0xa   :  { %200 = vset.pattern.permute.xlu1 %v210_v4  ;;  %199 = vset.pattern.permute.xlu0 %v210_v4 }
   0xb   :  { %111 = vperm.xlu1 %200, %v52_v3   ;;  %107 = vperm.xlu0 %199, %v51_v2  }
   0xf   :  { %201 = vset.pattern.permute.xlu1 %v209_v1  ;;  %202 = vset.pattern.permute.xlu0 %v209_v1 }
  0x10   :  { %31 = vperm.xlu1 %201, %v26_v5   ;;  %36 = vperm.xlu0 %202, %v27_v6  }
  0x14   :  { %203 = vset.pattern.permute.xlu0 %v210_v4 }
  0x7d   :  { %v83_v9 = vpop.permute.xlu1 %82  ;;  %v57_v10 = vpop.permute.xlu0 %56 }
  0x7e   :  { %v93_v11 = vsub.f32 %v83_v9, %v192_v7  ;;  %v68_v12 = vsub.f32 %v57_v10, %v191_v8 }
  0x80   :  { %v95_v13 = vadd.f32 0.5, %v93_v11  ;;  %v70_v14 = vadd.f32 0.5, %v68_v12 }
  0x81   :  { %v87_v15 = vpop.permute.xlu1 %86  ;;  %v62_v16 = vpop.permute.xlu0 %61 }
  0x82   :  { %v97_v17 = vfloor.f32 %v95_v13  ;;  %v72_v18 = vfloor.f32 %v70_v14  ;;  %v94_v19 = vsub.f32 %v87_v15, %v192_v7  ;;  %v69_v20 = vsub.f32 %v62_v16, %v191_v8 }
  0x84   :  { %v96_v21 = vadd.f32 0.5, %v94_v19  ;;  %v71_v22 = vadd.f32 0.5, %v69_v20  ;;  %v99_v24 = vsub.f32 %v93_v11, %v97_v17  ;;  %v74_v25 = vsub.f32 %v68_v12, %v72_v18 }
  0x86   :  { %v98_v26 = vfloor.f32 %v96_v21  ;;  %v73_v27 = vfloor.f32 %v71_v22  ;;  %v112_v28 = vpop.permute.xlu1 %111  ;;  %v108_v29 = vpop.permute.xlu0 %107  ;;  %v101_v36 = vmul.f32 %v99_v24, %v99_v24  ;;  %v76_v37 = vmul.f32 %v74_v25, %v74_v25 }
  0x87   :  { %v119_v30 = vsub.f32 %v112_v28, %v193_v23  ;;  %v118_v31 = vsub.f32 %v108_v29, %v193_v23 }
  0x88   :  { %v100_v32 = vsub.f32 %v94_v19, %v98_v26  ;;  %v75_v33 = vsub.f32 %v69_v20, %v73_v27  ;;  %v103_v44 = vadd.f32 %v101_v36, %v76_v37 }
  0x89   :  { %v121_v34 = vadd.f32 0.5, %v119_v30  ;;  %v120_v35 = vadd.f32 0.5, %v118_v31 }
  0x8a   :  { %v102_v38 = vmul.f32 %v100_v32, %v100_v32  ;;  %v77_v39 = vmul.f32 %v75_v33, %v75_v33 }
  0x8b   :  { %v123_v40 = vfloor.f32 %v121_v34  ;;  %v122_v41 = vfloor.f32 %v120_v35  ;;  %v37_v55 = vpop.permute.xlu0 %36  ;;  %v32_v56 = vpop.permute.xlu1 %31 }
  0x8c   :  { %v104_v45 = vadd.f32 %v102_v38, %v77_v39  ;;  %vm46_vm1 = vcmp.eq.f32.partialorder %v37_v55, %v190_v54  ;;  %vm45_vm3 = vcmp.eq.f32.partialorder %v32_v56, %v190_v54 }
  0x8d   :  { %v125_v42 = vsub.f32 %v119_v30, %v123_v40  ;;  %v124_v43 = vsub.f32 %v118_v31, %v122_v41  ;;  %vm50_vm5 = vmand %vm46_vm1, %vm48_vm0  ;;  %vm183_vm1 = vcmask 7168  }
  0x8e   :  { %vm49_vm7 = vmand %vm45_vm3, %vm47_vm2 }
  0x8f   :  { %v127_v46 = vmul.f32 %v125_v42, %v125_v42  ;;  %v126_v47 = vmul.f32 %v124_v43, %v124_v43 }
  0x91   :  { %v129_v48 = vadd.f32 %v127_v46, %v104_v45  ;;  %v128_v49 = vadd.f32 %v126_v47, %v103_v44 }
  0x93   :  { %204 = vrsqrt.f32 %v129_v48  ;;  %vm139_vm4 = vcmp.eq.f32.partialorder %v129_v48, inf  ;;  %v142_v61 = vand.u32 2147483648, %v129_v48  ;;  %vm132_vm8 = vcmp.eq.f32.partialorder %v128_v49, inf }
  0x94   :  { %206 = vrsqrt.f32 %v128_v49  ;;  %v135_v62 = vand.u32 2147483648, %v128_v49  ;;  %vm141_vm9 = vcmp.eq.f32.partialorder %v129_v48, 0.0  ;;  %vm134_vm10 = vcmp.eq.f32.partialorder %v128_v49, 0.0 }
  0xa0   :  { %v205_v57 = vpop.eup %204 }
  0xa1   :  { %v207_v58 = vpop.eup %206  ;;  %v138_v59 = vmul.f32 %v205_v57, %v129_v48 }
  0xa2   :  { %v131_v60 = vmul.f32 %v207_v58, %v128_v49 }
  0xa3   :  { %v140_v63 = vsel %vm139_vm4, %v129_v48, %v138_v59 }
  0xa4   :  { %v133_v0 = vsel %vm132_vm8, %v128_v49, %v131_v60  ;;  %v143_v1 = vsel %vm141_vm9, %v142_v61, %v140_v63 }
  0xa5   :  { %v136_v2 = vsel %vm134_vm10, %v135_v62, %v133_v0  ;;  %v145_v3 = vsel %vm50_vm5, %v143_v1, 1000.0 }
  0xa6   :  { %v144_v4 = vsel %vm49_vm7, %v136_v2, 1000.0  ;;  %v150_v5 = vsel %vm146_vm6, %v145_v3, inf }
  0xa7   :  { %v147_v6 = vsel %vm146_vm6, %v144_v4, inf  ;;  %151 = vmin.xlane.f32.xlu0 %v150_v5 }
  0xa8   :  { %148 = vmin.xlane.f32.xlu1 %v147_v6 }
 0x130   :  { %v152_v7 = vpop.xlane.xlu0 %151 }
 0x131   :  { %v149_v8 = vpop.xlane.xlu1 %148  ;;  %vm154_vm11 = vcmp.eq.f32.partialorder %v145_v3, %v152_v7 }
 0x132   :  { %vm153_vm12 = vcmp.eq.f32.partialorder %v144_v4, %v149_v8  ;;  %v156_v9 = vsel %vm154_vm11, 1000.0, %v145_v3 }
 0x133   :  { %v155_v10 = vsel %vm153_vm12, 1000.0, %v144_v4  ;;  %v160_v11 = vsel %vm146_vm6, %v156_v9, inf }
 0x134   :  { %v157_v12 = vsel %vm146_vm6, %v155_v10, inf  ;;  %161 = vmin.xlane.f32.xlu0 %v160_v11 }
 0x135   :  { %158 = vmin.xlane.f32.xlu1 %v157_v12 }
 0x1bd   :  { %v162_v13 = vpop.xlane.xlu0 %161 }
 0x1be   :  { %v159_v14 = vpop.xlane.xlu1 %158  ;;  %vm164_vm13 = vcmp.eq.f32.partialorder %v156_v9, %v162_v13 }
 0x1bf   :  { %vm163_vm14 = vcmp.eq.f32.partialorder %v155_v10, %v159_v14  ;;  %v166_v15 = vsel %vm164_vm13, 1000.0, %v156_v9 }
 0x1c0   :  { %v165_v16 = vsel %vm163_vm14, 1000.0, %v155_v10  ;;  %v170_v17 = vsel %vm146_vm6, %v166_v15, inf }
 0x1c1   :  { %v167_v18 = vsel %vm146_vm6, %v165_v16, inf  ;;  %171 = vmin.xlane.f32.xlu0 %v170_v17 }
 0x1c2   :  { %168 = vmin.xlane.f32.xlu1 %v167_v18 }
 0x24a   :  { %v172_v19 = vpop.xlane.xlu0 %171 }
 0x24b   :  { %v169_v20 = vpop.xlane.xlu1 %168  ;;  %vm174_vm15 = vcmp.eq.f32.partialorder %v166_v15, %v172_v19 }
 0x24c   :  { %vm173_vm0 = vcmp.eq.f32.partialorder %v165_v16, %v169_v20  ;;  %v176_v21 = vsel %vm174_vm15, 1000.0, %v166_v15 }
 0x24d   :  { %v175_v22 = vsel %vm173_vm0, 1000.0, %v165_v16  ;;  %v180_v23 = vsel %vm146_vm6, %v176_v21, inf }
 0x24e   :  { %v177_v24 = vsel %vm146_vm6, %v175_v22, inf  ;;  %181 = vmin.xlane.f32.xlu0 %v180_v23 }
 0x24f   :  { %178 = vmin.xlane.f32.xlu1 %v177_v24 }
 0x2d7   :  { %v182_v25 = vpop.xlane.xlu0 %181 }
 0x2d8   :  { %v179_v26 = vpop.xlane.xlu1 %178  ;;  %185 = vst.msk [vmem:[%s278_s4 + $0x8] sm:$0xff] %vm183_vm1, %v182_v25 }
 0x2d9   :  { %184 = vst.msk [vmem:[%s278_s4] sm:$0xff] %vm183_vm1, %v179_v26 }

</bundles_post_ra>
